<compile_context>
chip_gen: v6e
topology: v6e:2x2x1
jax: 0.10.0
libtpu: 0.0.40
codegen_flags: <defaults>
</compile_context>

<pallas_src>
import jax
import jax.numpy as jnp
from jax.experimental import pallas as pl
from jax.experimental.pallas import tpu as pltpu


def _round_up(x, m):
    return ((x + m - 1) // m) * m


def _make_av_fusion_kernel(bz, sv):
    """Build the kernel body with static batch / vision-spatial sizes."""

    def kernel(wt_ref, b_ref, v_ref, a_ref, o_ref):
        # wt_ref : (Cv, Ca)         conv1d(k=1) weight, transposed
        # b_ref  : (1, Ca)          conv1d bias (lane-axis row)
        # v_ref  : (bz*Sv, Cv)      vision, batch+spatial stacked on the M axis
        # a_ref  : (bz, Ca, Sa_pad) audio, lane-padded to 128
        # o_ref  : (bz, Sv, Sa_pad) fused output, lane-dense
        wt = wt_ref[...]
        bias = b_ref[...]

        # 1x1 conv over channels == one matmul fused across the whole batch.
        vw = jnp.dot(v_ref[...], wt, preferred_element_type=jnp.float32)
        vw = jnp.maximum(vw + bias, 0.0)                        # (bz*Sv, Ca)

        # Per-batch (Sv, Ca) @ (Ca, Sa_pad). bz is tiny and static, so this is
        # a trace-time unrolled loop inside ONE grid step (no pipeline cost).
        for b in range(bz):
            vw_b = vw[b * sv:(b + 1) * sv, :]                   # (Sv, Ca)
            out_b = jnp.dot(vw_b, a_ref[b],
                            preferred_element_type=jnp.float32)  # (Sv, Sa_pad)
            o_ref[b] = out_b.astype(o_ref.dtype)

    return kernel


def av_fusion_block(audiomap, visionmap, weight, bias):
    """audiomap: (bz, Ca, Ha, Wa), visionmap: (bz, Cv, Hv, Wv)
    weight: (Ca, Cv) conv1d(k=1) weight, bias: (Ca,)
    returns: (bz, Hv*Wv, Ha, Wa)"""
    bz, ca, ha, wa = audiomap.shape
    _, cv, hv, wv = visionmap.shape
    sv = hv * wv
    sa = ha * wa
    sa_pad = _round_up(sa, 128)          # lane-dense output stores

    # (bz*Sv, Cv): channel contraction lands on the LHS minor (lane) axis, so
    # both in-kernel matmuls are plain (M,K)x(K,N) with no transposed operand.
    v2 = jnp.transpose(visionmap.reshape(bz, cv, sv), (0, 2, 1))
    v2 = v2.reshape(bz * sv, cv)
    a_flat = audiomap.reshape(bz, ca, sa)
    if sa_pad != sa:
        a_flat = jnp.pad(a_flat, ((0, 0), (0, 0), (0, sa_pad - sa)))
    wt = jnp.transpose(weight)           # (Cv, Ca)
    b_row = bias.reshape(1, ca)

    itemsize = jnp.dtype(audiomap.dtype).itemsize
    cost = pl.CostEstimate(
        flops=2 * bz * sv * cv * ca + 2 * bz * sv * ca * sa_pad,
        transcendentals=0,
        bytes_accessed=itemsize * (wt.size + b_row.size + v2.size
                                   + a_flat.size + bz * sv * sa_pad),
    )

    out = pl.pallas_call(
        _make_av_fusion_kernel(bz, sv),
        out_shape=jax.ShapeDtypeStruct((bz, sv, sa_pad), audiomap.dtype),
        grid_spec=pltpu.PrefetchScalarGridSpec(
            num_scalar_prefetch=0,
            grid=(1,),                   # whole (tiny) problem in one step
            in_specs=[
                pl.BlockSpec((cv, ca), lambda i: (0, 0)),           # weight^T
                pl.BlockSpec((1, ca), lambda i: (0, 0)),            # bias row
                pl.BlockSpec((bz * sv, cv), lambda i: (0, 0)),      # vision
                pl.BlockSpec((bz, ca, sa_pad), lambda i: (0, 0, 0)),  # audio
            ],
            out_specs=pl.BlockSpec((bz, sv, sa_pad), lambda i: (0, 0, 0)),
        ),
        compiler_params=pltpu.CompilerParams(
            dimension_semantics=("arbitrary",)),
        cost_estimate=cost,
    )(wt, b_row, v2, a_flat)

    # NOTE: for large Sv/Sa one would instead tile with a ("parallel","parallel")
    # grid over (Sv, Sa) blocks sized to the per-generation VMEM budget
    # (64 MiB on v7x); at these shapes everything fits trivially in one block.
    return out[:, :, :sa].reshape(bz, sv, ha, wa)


def av_fusion_block_ref(audiomap, visionmap, weight, bias):
    """Pure-JAX reference matching the PyTorch forward."""
    bz, ca, ha, wa = audiomap.shape
    _, cv, hv, wv = visionmap.shape
    v_flat = visionmap.reshape(bz, cv, hv * wv)
    vision_w = jnp.einsum("ac,bcs->bas", weight, v_flat) + bias[None, :, None]
    vision_w = jnp.maximum(vision_w, 0.0)
    vision_w = jnp.transpose(vision_w, (0, 2, 1))                 # (bz, Sv, Ca)
    a_flat = audiomap.reshape(bz, ca, ha * wa)
    out = jnp.einsum("bsa,bat->bst", vision_w, a_flat)
    return out.reshape(bz, hv * wv, ha, wa)


if __name__ == "__main__":
    # Small, module-consistent shapes.
    bz = 2
    audio_channel = 8
    vision_channel = 32
    ha, wa = 8, 8       # audio spatial
    hv, wv = 4, 4       # vision spatial

    key = jax.random.PRNGKey(0)
    k1, k2, k3, k4 = jax.random.split(key, 4)

    audiomap = jax.random.normal(k1, (bz, audio_channel, ha, wa), dtype=jnp.float32)
    visionmap = jax.random.normal(k2, (bz, vision_channel, hv, wv), dtype=jnp.float32)

    # Deterministic Conv1d(vision_channel -> audio_channel, kernel_size=1) params.
    fan_in = vision_channel  # kernel_size=1
    bound = 1.0 / (fan_in ** 0.5)
    weight = jax.random.uniform(
        k3, (audio_channel, vision_channel), minval=-bound, maxval=bound,
        dtype=jnp.float32)
    bias = jax.random.uniform(
        k4, (audio_channel,), minval=-bound, maxval=bound, dtype=jnp.float32)

    out = av_fusion_block(audiomap, visionmap, weight, bias)
    out = jax.block_until_ready(out)

    ref = av_fusion_block_ref(audiomap, visionmap, weight, bias)
    assert out.shape == (bz, hv * wv, ha, wa), out.shape
    assert jnp.allclose(out, ref, atol=1e-4, rtol=1e-4), "mismatch vs reference"

    print("KERNEL_OK")
</pallas_src>

<mosaic_0001>
module attributes {stable_mosaic.version = 11 : i64} {
  func.func @kernel(%arg0: i32, %arg1: memref<32x8xf32, #tpu.memory_space<vmem>>, %arg2: memref<1x8xf32, #tpu.memory_space<vmem>>, %arg3: memref<32x32xf32, #tpu.memory_space<vmem>>, %arg4: memref<2x8x128xf32, #tpu.memory_space<vmem>>, %arg5: memref<2x16x128xf32, #tpu.memory_space<vmem>>) attributes {dimension_semantics = [#tpu.dimension_semantics<arbitrary>], iteration_bounds = array<i64: 1>, scalar_prefetch = 0 : i64, scratch_operands = 0 : i64, tpu.core_type = #tpu.core_type<tc>, window_params = [{pipeline_mode = #tpu.pipeline_mode<synchronous>, transform_indices = @transform_0, window_bounds = array<i64: 32, 8>}, {pipeline_mode = #tpu.pipeline_mode<synchronous>, transform_indices = @transform_1, window_bounds = array<i64: 1, 8>}, {pipeline_mode = #tpu.pipeline_mode<synchronous>, transform_indices = @transform_2, window_bounds = array<i64: 32, 32>}, {pipeline_mode = #tpu.pipeline_mode<synchronous>, transform_indices = @transform_3, window_bounds = array<i64: 2, 8, 128>}, {pipeline_mode = #tpu.pipeline_mode<synchronous>, transform_indices = @transform_4, window_bounds = array<i64: 2, 16, 128>}]} {
    %c0 = arith.constant 0 : index
    %c0_0 = arith.constant 0 : index
    %0 = vector.load %arg1[%c0, %c0_0] : memref<32x8xf32, #tpu.memory_space<vmem>>, vector<32x8xf32>
    %c0_1 = arith.constant 0 : index
    %c0_2 = arith.constant 0 : index
    %1 = vector.load %arg2[%c0_1, %c0_2] : memref<1x8xf32, #tpu.memory_space<vmem>>, vector<1x8xf32>
    %c0_3 = arith.constant 0 : index
    %c0_4 = arith.constant 0 : index
    %2 = vector.load %arg3[%c0_3, %c0_4] : memref<32x32xf32, #tpu.memory_space<vmem>>, vector<32x32xf32>
    %cst = arith.constant dense<0.000000e+00> : vector<32x8xf32>
    %3 = tpu.matmul %2, %0, %cst {dimension_numbers = #tpu.dot_dimension_numbers<[1], [0], [0], [1], [0, 0, 1, 1], [], []>} : vector<32x32xf32>, vector<32x8xf32>, vector<32x8xf32> -> vector<32x8xf32>
    %4 = vector.broadcast %1 : vector<1x8xf32> to vector<32x8xf32>
    %5 = arith.addf %3, %4 : vector<32x8xf32>
    %cst_5 = arith.constant 0.000000e+00 : f32
    %6 = vector.broadcast %cst_5 : f32 to vector<32x8xf32>
    %7 = arith.maximumf %5, %6 : vector<32x8xf32>
    %8 = vector.extract_strided_slice %7 {offsets = [0, 0], sizes = [16, 8], strides = [1, 1]} : vector<32x8xf32> to vector<16x8xf32>
    %c0_6 = arith.constant 0 : index
    %c0_7 = arith.constant 0 : index
    %c0_8 = arith.constant 0 : index
    %9 = vector.load %arg4[%c0_6, %c0_7, %c0_8] : memref<2x8x128xf32, #tpu.memory_space<vmem>>, vector<1x8x128xf32>
    %10 = vector.shape_cast %9 : vector<1x8x128xf32> to vector<8x128xf32>
    %cst_9 = arith.constant dense<0.000000e+00> : vector<16x128xf32>
    %11 = tpu.matmul %8, %10, %cst_9 {dimension_numbers = #tpu.dot_dimension_numbers<[1], [0], [0], [1], [0, 0, 1, 1], [], []>} : vector<16x8xf32>, vector<8x128xf32>, vector<16x128xf32> -> vector<16x128xf32>
    %c0_10 = arith.constant 0 : index
    %c0_11 = arith.constant 0 : index
    %c0_12 = arith.constant 0 : index
    %12 = vector.load %arg5[%c0_10, %c0_11, %c0_12] : memref<2x16x128xf32, #tpu.memory_space<vmem>>, vector<1x16x128xf32>
    %13 = vector.shape_cast %12 : vector<1x16x128xf32> to vector<16x128xf32>
    %14 = vector.shape_cast %11 : vector<16x128xf32> to vector<1x16x128xf32>
    tpu.vector_store %arg5[%c0_10, %c0_11, %c0_12], %14 {strides = array<i32>} : memref<2x16x128xf32, #tpu.memory_space<vmem>>, vector<1x16x128xf32>,
    %15 = vector.extract_strided_slice %7 {offsets = [16, 0], sizes = [16, 8], strides = [1, 1]} : vector<32x8xf32> to vector<16x8xf32>
    %c1 = arith.constant 1 : index
    %c0_13 = arith.constant 0 : index
    %c0_14 = arith.constant 0 : index
    %16 = vector.load %arg4[%c1, %c0_13, %c0_14] : memref<2x8x128xf32, #tpu.memory_space<vmem>>, vector<1x8x128xf32>
    %17 = vector.shape_cast %16 : vector<1x8x128xf32> to vector<8x128xf32>
    %cst_15 = arith.constant dense<0.000000e+00> : vector<16x128xf32>
    %18 = tpu.matmul %15, %17, %cst_15 {dimension_numbers = #tpu.dot_dimension_numbers<[1], [0], [0], [1], [0, 0, 1, 1], [], []>} : vector<16x8xf32>, vector<8x128xf32>, vector<16x128xf32> -> vector<16x128xf32>
    %c1_16 = arith.constant 1 : index
    %c0_17 = arith.constant 0 : index
    %c0_18 = arith.constant 0 : index
    %19 = vector.load %arg5[%c1_16, %c0_17, %c0_18] : memref<2x16x128xf32, #tpu.memory_space<vmem>>, vector<1x16x128xf32>
    %20 = vector.shape_cast %19 : vector<1x16x128xf32> to vector<16x128xf32>
    %21 = vector.shape_cast %18 : vector<16x128xf32> to vector<1x16x128xf32>
    tpu.vector_store %arg5[%c1_16, %c0_17, %c0_18], %21 {strides = array<i32>} : memref<2x16x128xf32, #tpu.memory_space<vmem>>, vector<1x16x128xf32>,
    return
  }
  func.func @transform_0(%arg0: i32) -> (i32, i32) {
    %c0_i32 = arith.constant 0 : i32
    %c0_i32_0 = arith.constant 0 : i32
    %c0_i32_1 = arith.constant 0 : i32
    return %c0_i32, %c0_i32_0 : i32, i32
  }
  func.func @transform_1(%arg0: i32) -> (i32, i32) {
    %c0_i32 = arith.constant 0 : i32
    %c0_i32_0 = arith.constant 0 : i32
    %c0_i32_1 = arith.constant 0 : i32
    return %c0_i32, %c0_i32_0 : i32, i32
  }
  func.func @transform_2(%arg0: i32) -> (i32, i32) {
    %c0_i32 = arith.constant 0 : i32
    %c0_i32_0 = arith.constant 0 : i32
    %c0_i32_1 = arith.constant 0 : i32
    return %c0_i32, %c0_i32_0 : i32, i32
  }
  func.func @transform_3(%arg0: i32) -> (i32, i32, i32) {
    %c0_i32 = arith.constant 0 : i32
    %c0_i32_0 = arith.constant 0 : i32
    %c0_i32_1 = arith.constant 0 : i32
    %c0_i32_2 = arith.constant 0 : i32
    return %c0_i32, %c0_i32_0, %c0_i32_1 : i32, i32, i32
  }
  func.func @transform_4(%arg0: i32) -> (i32, i32, i32) {
    %c0_i32 = arith.constant 0 : i32
    %c0_i32_0 = arith.constant 0 : i32
    %c0_i32_1 = arith.constant 0 : i32
    %c0_i32_2 = arith.constant 0 : i32
    return %c0_i32, %c0_i32_0, %c0_i32_1 : i32, i32, i32
  }
}

</mosaic_0001>

<bundles_post_ra>
// kernel: tpu_custom_call.1
= control target key start
LH: loop header
LB: loop body
LE: loop exit
PB: predicated region body
PF: predicated region fallthrough
CT: control target
= control target key end

     0   :  { %9 = vsyncpa [#allocation3], 0  ;;  %s504_s0 = inlined_call_operand.vmem [shape: f32[32,8], index: 0, kind: input, shape index: {}]   ;;  %s505_s1 = inlined_call_operand.vmem [shape: f32[1,8], index: 1, kind: input, shape index: {}]   ;;  %s506_s2 = inlined_call_operand.vmem [shape: f32[32,32], index: 2, kind: input, shape index: {}]   ;;  %s507_s3 = inlined_call_operand.hbm [shape: f32[2,8,128], index: 3, kind: input, shape index: {}]   ;;  %s508_s4 = inlined_call_operand.hbm [shape: f32[2,16,128], index: 4, kind: output, shape index: {}]  }
   0x1   :  { %10 = vsyncpa [#allocation4], 0  ;;  %s432_s15 = smov [#allocation2]  }
   0x2   :  { %s22_s16 = sshll.u32 %s432_s15, 4  ;;  %s23_s16 = int_to_ptr.vmem [resolvable:$true] %s22_s16 }
   0x3   :  { %s396_s17 = scalar_lea.vmem %s23_s16, 256  ;;  %p401_p1 = scmp.lt.s32.totalorder %s23_s16, %s23_s16 }
   0x4   :  { %p397_p0 = scmp.ne.s32.totalorder %s23_s16, %s396_s17  ;;  %p402_p2 = scmp.lt.s32.totalorder %s396_s17, %s396_s17 }
   0x6   :  { %p403_p3 = por %p402_p2, %p401_p1 }
   0x8   :  { %p404_p4 = pnand %p403_p3, %p397_p0 }
   0xa   :  { %407 = shalt.err (!%p404_p4)
}
   0xb   :  { %s433_s18 = smov 128   ;;  %s434_s19 = smov 8  }
   0xc   :  { %28 = dma.hbm_to_vmem [thread:$0]  %s507_s3, 256, %s23_s16, [#allocation3], %s433_s18, %s433_s18, %s434_s19  }
   0xd   :  { %428 = dma.done.wait [#allocation3], 256  }
   0xe   :  { %429 = vsyncadd [#allocation3], 4294967040  ;;  %vm47_vm0 = vcmask 261120   ;;  %v35_v0 = vld [vmem:[%s504_s0 + $0x18] sm:$0xff]  ;;  %v34_v1 = vld [vmem:[%s504_s0 + $0x10] sm:$0xff]  ;;  %vm150_vm1 = vcmask 64512  }
   0xf   :  { %360 = vmatprep.subr.mxu0 %v35_v0  ;;  %v37_v2 = vld [vmem:[%s506_s2] sm:$0xff]  ;;  %v33_v3 = vld [vmem:[%s504_s0 + $0x8] sm:$0xff]  ;;  %v39_v6 = vld [vmem:[%s506_s2 + $0x10] sm:$0xff] }
  0x10   :  { %361 = vmatpush3.msra.mxu0 %v35_v0  ;;  %368 = vmatprep.mubr.msk.f32.mxu0 %vm47_vm0, %v37_v2  ;;  %v32_v4 = vld [vmem:[%s504_s0] sm:$0xff]  ;;  %v38_v5 = vld [vmem:[%s506_s2 + $0x8] sm:$0xff]  ;;  %v40_v7 = vld [vmem:[%s506_s2 + $0x18] sm:$0xff] }
  0x11   :  { %362 = vmatprep.subr.mxu0 %v34_v1  ;;  %v149_v8 = vld [vmem:[#allocation2] sm:$0xff]  ;;  %v235_v9 = vld [vmem:[#allocation2 + $0x8] sm:$0xff] }
  0x12   :  { %363 = vmatpush3.msra.mxu0 %v34_v1  ;;  %374 = vmatprep.subr.mxu1 %v149_v8  ;;  %v337_v10 = vld [vmem:[%s505_s1] ss:$0 sm:$0xff]  ;;  %s435_s1 = smov [#allocation5]  }
  0x13   :  { %364 = vmatprep.subr.mxu0 %v33_v3  ;;  %375 = vmatpush3.msra.mxu1 %v149_v8  ;;  %s325_s2 = sshll.u32 %s435_s1, 4  ;;  %s326_s2 = int_to_ptr.vmem [resolvable:$true] %s325_s2 }
  0x14   :  { %365 = vmatpush3.msra.mxu0 %v33_v3  ;;  %379 = vmatprep.subr.mxu1 %v235_v9  ;;  %s408_s12 = scalar_lea.vmem %s326_s2, 512  ;;  %p413_p6 = scmp.lt.s32.totalorder %s326_s2, %s326_s2 }
  0x15   :  { %366 = vmatprep.subr.mxu0 %v32_v4  ;;  %p409_p5 = scmp.ne.s32.totalorder %s326_s2, %s408_s12  ;;  %p414_p7 = scmp.lt.s32.totalorder %s408_s12, %s408_s12 }
  0x16   :  { %367 = vmatpush3.msra.mxu0 %v32_v4 }
  0x17   :  { %369 = vmatmul.mubr.msk.f32.vlgmr.msra.gmra.mxu0 %vm47_vm0, %v38_v5  ;;  %p415_p8 = por %p414_p7, %p413_p6 }
  0x18   :  { %371 = vmatprep.mubr.msk.f32.mxu0 %vm47_vm0, %v39_v6 }
  0x19   :  { %p416_p9 = pnand %p415_p8, %p409_p5 }
  0x1b   :  { %372 = vmatmul.mubr.msk.f32.gmra.mxu0 %vm47_vm0, %v40_v7 }
  0xd7   :  { %v370_v11 = vpop.f32.mrf.mxu0 }
  0xd8   :  { %v132_v12 = vadd.f32 %v370_v11, %v337_v10 }
  0xd9   :  { %v126_v13 = vpop.f32.mrf.mxu0 }
  0xda   :  { %v127_v14 = vadd.f32 %v337_v10, %v126_v13  ;;  %v146_v17 = vmax.f32 %v132_v12, 0.0 }
  0xdb   :  { %v373_v15 = vpop.f32.mrf.mxu0 }
  0xdc   :  { %v145_v16 = vmax.f32 %v127_v14, 0.0  ;;  %v142_v18 = vadd.f32 %v373_v15, %v337_v10 }
  0xdd   :  { %v136_v19 = vpop.f32.mrf.mxu0 }
  0xde   :  { %v137_v20 = vadd.f32 %v337_v10, %v136_v19  ;;  %376 = vmatprep.mubr.msk.f32.mxu1 %vm150_vm1, %v145_v16  ;;  %v148_v22 = vmax.f32 %v142_v18, 0.0 }
  0xdf   :  { %377 = vmatmul.mubr.msk.f32.vlgmr.msra.gmra.mxu1 %vm150_vm1, %v146_v17 }
  0xe0   :  { %v147_v21 = vmax.f32 %v137_v20, 0.0  ;;  %380 = vmatpush3.msra.mxu1 %v235_v9 }
  0xe2   :  { %381 = vmatprep.mubr.msk.f32.mxu1 %vm150_vm1, %v147_v21 }
  0xe3   :  { %382 = vmatmul.mubr.msk.f32.vlgmr.msra.gmra.mxu1 %vm150_vm1, %v148_v22 }
 0x19f   :  { %v378_v23 = vpop.f32.mrf.mxu1 }
 0x1a0   :  { %233 = vst [vmem:[#allocation5 + $0x8] sm:$0xff] %v378_v23 }
 0x1a1   :  { %v223_v24 = vpop.f32.mrf.mxu1 }
 0x1a2   :  { %232 = vst [vmem:[#allocation5] sm:$0xff] %v223_v24 }
 0x1a3   :  { %v383_v25 = vpop.f32.mrf.mxu1 }
 0x1a4   :  { %319 = vst [vmem:[#allocation5 + $0x18] sm:$0xff] %v383_v25 }
 0x1a5   :  { %v308_v26 = vpop.f32.mrf.mxu1 }
 0x1a6   :  { %318 = vst [vmem:[#allocation5 + $0x10] sm:$0xff] %v308_v26 }
 0x1a7   :  { %419 = shalt.err (!%p416_p9)
}
 0x1a8   :  { %331 = dma.vmem_to_hbm [thread:$0]  %s326_s2, 512, %s508_s4, [#allocation4], %s433_s18, %s433_s18, %s434_s19  }
 0x1a9   :  { %430 = dma.done.wait [#allocation4], 512  }
 0x1aa   :  { %431 = vsyncadd [#allocation4], 4294966784 }
 0x1ab   :  { %335 = vsyncpa [#allocation3], 1 }
 0x1ac   :  { %336 = vsyncpa [#allocation4], 1 }

</bundles_post_ra>
